<compile_context>
chip_gen: v5e
topology: v5e:2x2
jax: 0.10.0
libtpu: 0.0.40
codegen_flags: <defaults>
</compile_context>

<pallas_src>
import jax
import jax.numpy as jnp
from jax.experimental import pallas as pl
from jax.experimental.pallas import tpu as pltpu

CLASSNUM = 10      # out_features
OUTPUTDIM = 60     # in_features

_LANE = 128        # f32 lane width / vreg lane count


def _matmul_kernel(x_ref, w_ref, o_ref):
    # cos_theta tile = x_tile @ w, accumulated in f32 on the MXU.
    o_ref[...] = jnp.dot(
        x_ref[...], w_ref[...], preferred_element_type=jnp.float32
    ).astype(o_ref.dtype)


def softmax_pedcc_forward(x, weight, *, tile_m=512, compute_dtype=jnp.bfloat16):
    """cos_theta = x @ weight.

    x:      (B, in_features)  float32
    weight: (in_features, out_features) float32 (fixed PEDCC centers)
    Returns (B, out_features) float32.
    """
    B, K = x.shape
    K2, N = weight.shape
    assert K == K2, "in_features mismatch"

    # Lane-dense output: pad weight columns up to a multiple of 128.
    n_pad = ((N + _LANE - 1) // _LANE) * _LANE
    w = weight.astype(compute_dtype)
    if n_pad != N:
        w = jnp.pad(w, ((0, 0), (0, n_pad - N)))
    xc = x.astype(compute_dtype)

    # Batch tile: full batch if small (block == full dim is always legal),
    # otherwise a multiple-of-8 tile; ragged last block is handled by Pallas
    # (OOB output rows are masked on writeback, and each output row depends
    # only on the same input row, so valid rows are exact).
    tm = B if B <= tile_m else tile_m
    grid = (pl.cdiv(B, tm),)

    itemsize = jnp.dtype(compute_dtype).itemsize
    cost = pl.CostEstimate(
        flops=2 * B * K * n_pad,
        transcendentals=0,
        bytes_accessed=B * K * itemsize + K * n_pad * itemsize + B * n_pad * 4,
    )

    out = pl.pallas_call(
        _matmul_kernel,
        out_shape=jax.ShapeDtypeStruct((B, n_pad), jnp.float32),
        grid=grid,
        in_specs=[
            pl.BlockSpec((tm, K), lambda i: (i, 0)),        # x tile per step
            pl.BlockSpec((K, n_pad), lambda i: (0, 0)),     # weight resident
        ],
        out_specs=pl.BlockSpec((tm, n_pad), lambda i: (i, 0)),
        compiler_params=pltpu.CompilerParams(
            dimension_semantics=("parallel",),              # shard across TCs (v7x)
        ),
        cost_estimate=cost,
    )(xc, w)

    # Drop the zero-padded columns. Cheap XLA slice; fuses into downstream ops.
    return out[:, :N]


def make_pedcc_weight(in_features, out_features, key):
    # Deterministic synthetic stand-in for the PEDCC pickle:
    # out_features class centers in R^{in_features}, each L2-normalized,
    # stored column-wise (matches the .permute(1, 0) in __init__).
    centers = jax.random.normal(key, (out_features, in_features), jnp.float32)
    centers = centers / jnp.linalg.norm(centers, axis=1, keepdims=True)
    return centers.T  # (in_features, out_features)


if __name__ == "__main__":
    key = jax.random.PRNGKey(0)
    kx, kw = jax.random.split(key)

    batch = 8
    x = jax.random.normal(kx, (batch, OUTPUTDIM), jnp.float32)
    weight = make_pedcc_weight(OUTPUTDIM, CLASSNUM, kw)

    # Default (bf16 inputs, f32 accumulate) path.
    cos_theta = jax.block_until_ready(softmax_pedcc_forward(x, weight))
    assert cos_theta.shape == (batch, CLASSNUM)
    ref_bf16 = (x.astype(jnp.bfloat16).astype(jnp.float32)
                @ weight.astype(jnp.bfloat16).astype(jnp.float32))
    assert jnp.allclose(cos_theta, ref_bf16, atol=1e-4, rtol=1e-4)
    # Loose check against the exact f32 reference (bf16 input rounding only).
    assert jnp.allclose(cos_theta, x @ weight, atol=5e-2, rtol=5e-2)

    # Full-precision path matches the exact torch.mm semantics tightly.
    cos_f32 = jax.block_until_ready(
        softmax_pedcc_forward(x, weight, compute_dtype=jnp.float32))
    assert jnp.allclose(cos_f32, x @ weight, atol=1e-4, rtol=1e-4)

    print("KERNEL_OK")
</pallas_src>

<mosaic_0001>
module attributes {stable_mosaic.version = 11 : i64} {
  func.func @_matmul_kernel(%arg0: i32, %arg1: memref<8x60xbf16, #tpu.memory_space<vmem>>, %arg2: memref<60x128xbf16, #tpu.memory_space<vmem>>, %arg3: memref<8x128xf32, #tpu.memory_space<vmem>>) attributes {dimension_semantics = [#tpu.dimension_semantics<parallel>], iteration_bounds = array<i64: 1>, scalar_prefetch = 0 : i64, scratch_operands = 0 : i64, tpu.core_type = #tpu.core_type<tc>, window_params = [{transform_indices = @transform_0, window_bounds = array<i64: 8, 60>}, {pipeline_mode = #tpu.pipeline_mode<synchronous>, transform_indices = @transform_1, window_bounds = array<i64: 60, 128>}, {transform_indices = @transform_2, window_bounds = array<i64: 8, 128>}]} {
    %c0 = arith.constant 0 : index
    %c0_0 = arith.constant 0 : index
    %0 = vector.load %arg1[%c0, %c0_0] : memref<8x60xbf16, #tpu.memory_space<vmem>>, vector<8x60xbf16>
    %c0_1 = arith.constant 0 : index
    %c0_2 = arith.constant 0 : index
    %1 = vector.load %arg2[%c0_1, %c0_2] : memref<60x128xbf16, #tpu.memory_space<vmem>>, vector<60x128xbf16>
    %cst = arith.constant dense<0.000000e+00> : vector<8x128xf32>
    %2 = tpu.matmul %0, %1, %cst {dimension_numbers = #tpu.dot_dimension_numbers<[1], [0], [0], [1], [0, 0, 1, 1], [], []>} : vector<8x60xbf16>, vector<60x128xbf16>, vector<8x128xf32> -> vector<8x128xf32>
    %c0_3 = arith.constant 0 : index
    %c0_4 = arith.constant 0 : index
    %3 = vector.load %arg3[%c0_3, %c0_4] : memref<8x128xf32, #tpu.memory_space<vmem>>, vector<8x128xf32>
    tpu.vector_store %arg3[%c0_3, %c0_4], %2 {strides = array<i32>} : memref<8x128xf32, #tpu.memory_space<vmem>>, vector<8x128xf32>,
    return
  }
  func.func @transform_0(%arg0: i32) -> (i32, i32) {
    %c0_i32 = arith.constant 0 : i32
    %c0_i32_0 = arith.constant 0 : i32
    return %arg0, %c0_i32 : i32, i32
  }
  func.func @transform_1(%arg0: i32) -> (i32, i32) {
    %c0_i32 = arith.constant 0 : i32
    %c0_i32_0 = arith.constant 0 : i32
    %c0_i32_1 = arith.constant 0 : i32
    return %c0_i32, %c0_i32_0 : i32, i32
  }
  func.func @transform_2(%arg0: i32) -> (i32, i32) {
    %c0_i32 = arith.constant 0 : i32
    %c0_i32_0 = arith.constant 0 : i32
    return %arg0, %c0_i32 : i32, i32
  }
}

</mosaic_0001>

<bundles_post_ra>
// kernel: tpu_custom_call.1
= control target key start
LH: loop header
LB: loop body
LE: loop exit
PB: predicated region body
PF: predicated region fallthrough
CT: control target
= control target key end

     0   :  { %7 = vsyncpa [#allocation3], 0  ;;  %s248_s0 = inlined_call_operand.hbm [shape: bf16[8,60], index: 0, kind: input, shape index: {}]   ;;  %s249_s1 = inlined_call_operand.hbm [shape: bf16[60,128], index: 1, kind: input, shape index: {}]   ;;  %s250_s2 = inlined_call_operand.hbm [shape: f32[8,128], index: 2, kind: output, shape index: {}]  }
   0x1   :  { %8 = vsyncpa [#allocation6], 0 }
   0x2   :  { %9 = vsyncpa [#allocation4], 0  ;;  %s15_s11 = sshll.u32 %s248_s0, 4  ;;  %s219_s12 = smov [#allocation2]   ;;  %s16_s11 = int_to_ptr.hbm [resolvable:$true] %s15_s11 }
   0x3   :  { %s17_s13 = sshll.u32 %s219_s12, 4  ;;  %s25_s16 = sshll.u32 %s249_s1, 4  ;;  %s18_s13 = int_to_ptr.vmem [resolvable:$true] %s17_s13  ;;  %s26_s16 = int_to_ptr.hbm [resolvable:$true] %s25_s16 }
   0x4   :  { %20 = dma.hbm_to_vmem [thread:$0]  %s16_s11, 64, %s18_s13, [#allocation3]  }
   0x5   :  { %s220_s17 = smov [#allocation5]   ;;  %s221_s19 = smov 64  }
   0x6   :  { %s27_s18 = sshll.u32 %s220_s17, 4  ;;  %s222_s20 = smov 4   ;;  %s28_s18 = int_to_ptr.vmem [resolvable:$true] %s27_s18 }
   0x7   :  { %33 = dma.hbm_to_vmem [thread:$0]  %s26_s16, 512, %s28_s18, [#allocation6], %s221_s19, %s221_s19, %s222_s20  }
   0x8   :  { %213 = dma.done.wait [#allocation3], 64  }
   0x9   :  { %214 = vsyncadd [#allocation3], 4294967232 }
   0xa   :  { %215 = dma.done.wait [#allocation6], 512  }
   0xb   :  { %216 = vsyncadd [#allocation6], 4294966784  ;;  %v129_v0 = vld [vmem:[#allocation5 + $0x18] sm:$0xf]  ;;  %v135_v1 = vld [vmem:[#allocation5 + $0x18] sm:$0x30] }
   0xc   :  { %vm79_vm0 = vcmask 1045504   ;;  %v130_v2 = vor.u32 %v135_v1, %v129_v0  ;;  %v134_v4 = vld [vmem:[#allocation5 + $0x10] sm:$0xff]  ;;  %v133_v5 = vld [vmem:[#allocation5 + $0x8] sm:$0xff]  ;;  %v132_v6 = vld [vmem:[#allocation5] sm:$0xff]  ;;  %vm75_vm1 = vcmask 490496   ;;  %s223_s0 = smov [#allocation7]  }
   0xd   :  { %v43_v7 = vld [vmem:[#allocation2] sm:$0xf]  ;;  %s102_s1 = sshll.u32 %s223_s0, 4  ;;  %s104_s23 = sshll.u32 %s250_s2, 4  ;;  %s103_s1 = int_to_ptr.vmem [resolvable:$true] %s102_s1  ;;  %s105_s23 = int_to_ptr.hbm [resolvable:$true] %s104_s23 }
   0xe   :  { %v81_v3 = vsel %vm79_vm0, %v130_v2, 0 }
   0xf   :  { %87 = vmatpush.bf16.msra.mxu0 %v81_v3 }
  0x13   :  { %88 = vmatpush.bf16.msra.mxu0 %v134_v4 }
  0x17   :  { %89 = vmatpush.bf16.msra.mxu0 %v133_v5 }
  0x1b   :  { %90 = vmatpush.bf16.msra.mxu0 %v132_v6 }
  0x1e   :  { %131 = vmatmul.msk.bf16.vlgmr.msra.gmra.mxu0 %vm75_vm1, %v43_v7 }
  0x9b   :  { %v92_v8 = vpop.f32.mrf.mxu0 }
  0x9c   :  { %96 = vst [vmem:[#allocation7] sm:$0xff] %v92_v8 }
  0x9d   :  { %107 = dma.vmem_to_hbm [thread:$0]  %s103_s1, 128, %s105_s23, [#allocation4]  }
  0xa3   :  { %v94_v9 = vpop.f32.mrf.mxu0 }
  0xa4   :  { %217 = dma.done.wait [#allocation4], 128  }
  0xa5   :  { %218 = vsyncadd [#allocation4], 4294967168 }
  0xa6   :  { %112 = vsyncpa [#allocation3], 1 }
  0xa7   :  { %113 = vsyncpa [#allocation6], 1 }
  0xa8   :  { %114 = vsyncpa [#allocation4], 1 }

</bundles_post_ra>
